<compile_context>
chip_gen: v7x
topology: tpu7x:2x2x1
jax: 0.10.0
libtpu: 0.0.40
codegen_flags: <defaults>
</compile_context>

<pallas_src>
import jax
import jax.numpy as jnp
from jax.experimental import pallas as pl
from jax.experimental.pallas import tpu as pltpu

LANE = 128
_XN_RESIDENT_BUDGET = 24 * 1024 * 1024   # double-buffered Xn budget (v7x-safe)
_VMEM_LIMIT = 48 * 1024 * 1024


def _round_up(x, m):
    return ((x + m - 1) // m) * m


def _pad2d(arr, rows, cols, dtype=None):
    out = jnp.pad(arr, ((0, rows - arr.shape[0]), (0, cols - arr.shape[1])))
    return out.astype(dtype) if dtype is not None else out


def _balanced_tile(n, t_max, quantum):
    """Largest tile <= t_max (multiple of quantum) that splits n evenly-ish."""
    t_max = max(quantum, min(t_max, _round_up(n, quantum)))
    n_tiles = -(-n // t_max)
    return _round_up(-(-n // n_tiles), quantum)


def _choose_tiles(n, tm_max, tk_max):
    tm = _balanced_tile(n, tm_max, 32)          # 32: int8 A sublane packing
    if n > 64:
        # Keep >= 2 row tiles so the "parallel" axis shards across v7x's 2 TensorCores.
        tm = min(tm, _round_up(-(-n // 2), 32))
    tk = _balanced_tile(n, tk_max, LANE)
    return tm, tk


def prepare_graph(adj, tm, tk):
    """One-time adjacency prep shared by both layers.

    adj: dense binary {0,1} adjacency, adj[dst, src] (any numeric dtype).
    Returns (A_padded int8 [n_row_p, n_col_p], inv_deg f32 [n_row_p, 1]).
    """
    n = adj.shape[0]
    n_row_p = _round_up(n, tm)
    n_col_p = _round_up(n, tk)
    a_p = _pad2d(adj.astype(jnp.int8), n_row_p, n_col_p)            # raw {0,1}, 1 B/elem
    indeg = jnp.sum(adj.astype(jnp.float32), axis=1, keepdims=True)
    inv_deg = 1.0 / jnp.maximum(indeg, 1.0)                          # 0-deg rows -> agg 0
    inv_p = jnp.pad(inv_deg, ((0, n_row_p - n), (0, 0)))
    return a_p, inv_p


def _make_sage_layer_kernel(has_w_post, xn_resident):
    """Tiled mean-SAGEConv layer kernel.

    grid = (n_row_tiles, n_k_tiles); per step:
        acc[i] += bf16(A_int8[i, k]) @ Xn[k]          (f32 accumulate)
    finalize (k == last):
        agg    = inv_deg[i] * acc[i]                  (mean normalization)
        out[i] = (agg @ W_neigh if has_w_post else agg) + Xs[i] @ W_self + b
    """

    def kernel(*refs):
        if has_w_post:
            a_ref, xn_ref, xs_ref, inv_ref, wn_ref, ws_ref, b_ref, out_ref, acc_ref = refs
        else:
            a_ref, xn_ref, xs_ref, inv_ref, ws_ref, b_ref, out_ref, acc_ref = refs
            wn_ref = None

        k = pl.program_id(1)

        @pl.when(k == 0)
        def _():
            acc_ref[...] = jnp.zeros_like(acc_ref)

        tk = a_ref.shape[1]
        if xn_resident:
            off = pl.multiple_of(k * tk, LANE)
            xn = xn_ref[pl.ds(off, tk), :]        # VMEM-resident Xn, slice current K chunk
        else:
            xn = xn_ref[...]

        # Dominant O(N^2) stream: 1 B/elem int8 A tile -> bf16 in VMEM -> MXU, f32 acc.
        a_bf16 = a_ref[...].astype(jnp.bfloat16)
        acc_ref[...] += jnp.dot(a_bf16, xn, preferred_element_type=jnp.float32)

        @pl.when(k == pl.num_programs(1) - 1)
        def _():
            agg = acc_ref[...] * inv_ref[...]     # exact f32 1/deg mean normalization
            if has_w_post:
                agg = jnp.dot(agg, wn_ref[...], preferred_element_type=jnp.float32)
            out = (agg
                   + jnp.dot(xs_ref[...], ws_ref[...],
                             preferred_element_type=jnp.float32)
                   + b_ref[...])
            out_ref[...] = out.astype(out_ref.dtype)

    return kernel


def sage_conv_layer(a_p, inv_p, x, w_self, w_neigh, bias, *, tm, tk):
    """One DGL mean-SAGEConv: x @ W_self + ((A @ x) * inv_deg) @ W_neigh + bias."""
    n, f_in = x.shape
    f_out = w_self.shape[1]
    n_row_p, n_col_p = a_p.shape

    f_in_p = _round_up(f_in, LANE)
    f_out_p = _round_up(f_out, LANE)

    # Reassociation: when the output width is not larger, transform first
    # (t = x @ W_neigh, tiny f32 matmul) so the N^2-scaled aggregation runs over
    # the smaller feature width and the finalize needs no post-matmul.
    pre_transform = f_out_p <= f_in_p
    if pre_transform:
        xn = jnp.dot(x, w_neigh)                 # f32 pre-transform
        f_agg = f_out_p
    else:
        xn = x
        f_agg = f_in_p

    # Lane-dense padded operands; streamed/resident feature slabs in bf16.
    xn_p = _pad2d(xn.astype(jnp.float32), n_col_p, f_agg, jnp.bfloat16)
    xs_p = _pad2d(x.astype(jnp.float32), n_row_p, f_in_p, jnp.bfloat16)
    ws_p = _pad2d(w_self.astype(jnp.float32), f_in_p, f_out_p, jnp.bfloat16)
    b_p = _pad2d(jnp.asarray(bias, jnp.float32).reshape(1, -1), 1, f_out_p)

    grid = (n_row_p // tm, n_col_p // tk)

    # Make Xn fully VMEM-resident (single DMA) when its 2-buffer footprint fits budget.
    xn_bytes = n_col_p * f_agg * 2
    xn_resident = (2 * xn_bytes) <= _XN_RESIDENT_BUDGET

    in_specs = [pl.BlockSpec((tm, tk), lambda i, k: (i, k))]          # A tile (streamed)
    if xn_resident:
        in_specs.append(pl.BlockSpec((n_col_p, f_agg), lambda i, k: (0, 0)))   # resident
    else:
        in_specs.append(pl.BlockSpec((tk, f_agg), lambda i, k: (k, 0)))        # streamed
    in_specs += [
        pl.BlockSpec((tm, f_in_p), lambda i, k: (i, 0)),   # self features (resident over k)
        pl.BlockSpec((tm, 1), lambda i, k: (i, 0)),        # inv_deg column (resident over k)
    ]
    args = [a_p, xn_p, xs_p, inv_p]
    if not pre_transform:
        wn_p = _pad2d(w_neigh.astype(jnp.float32), f_in_p, f_out_p)   # f32: tiny, resident
        in_specs.append(pl.BlockSpec((f_in_p, f_out_p), lambda i, k: (0, 0)))
        args.append(wn_p)
    in_specs += [
        pl.BlockSpec((f_in_p, f_out_p), lambda i, k: (0, 0)),         # W_self (resident)
        pl.BlockSpec((1, f_out_p), lambda i, k: (0, 0)),              # bias   (resident)
    ]
    args += [ws_p, b_p]

    out_p = pl.pallas_call(
        _make_sage_layer_kernel(has_w_post=not pre_transform, xn_resident=xn_resident),
        out_shape=jax.ShapeDtypeStruct((n_row_p, f_out_p), jnp.float32),
        grid=grid,
        in_specs=in_specs,
        out_specs=pl.BlockSpec((tm, f_out_p), lambda i, k: (i, 0)),
        scratch_shapes=[pltpu.VMEM((tm, f_agg), jnp.float32)],
        compiler_params=pltpu.CompilerParams(
            dimension_semantics=("parallel", "arbitrary"),
            vmem_limit_bytes=_VMEM_LIMIT),
    )(*args)

    return out_p[:n, :f_out]


def sage_forward(adj, x, w_self1, w_neigh1, b1, w_self2, w_neigh2, b2,
                 *, tm=512, tk=2048):
    """Matches SAGE.forward: returns (h, middle_feat=[h1, relu(h1), h2]).

    adj: dense binary adjacency adj[dst, src] (no normalization; mean is done in-kernel).
    """
    n = adj.shape[0]
    tm, tk = _choose_tiles(n, tm, tk)
    # Hoisted, shared O(N^2) adjacency prep (padded int8 + f32 inv_deg), done exactly once.
    a_p, inv_p = prepare_graph(adj, tm, tk)

    h1 = sage_conv_layer(a_p, inv_p, x, w_self1, w_neigh1, b1, tm=tm, tk=tk)
    r1 = jnp.maximum(h1, 0.0)   # relu in wrapper: no second (N, hid) HBM writeback
    h2 = sage_conv_layer(a_p, inv_p, r1, w_self2, w_neigh2, b2, tm=tm, tk=tk)
    return h2, [h1, r1, h2]


def sage_reference(a_norm, x, w_self1, w_neigh1, b1, w_self2, w_neigh2, b2):
    h1 = x @ w_self1 + (a_norm @ x) @ w_neigh1 + b1
    r1 = jnp.maximum(h1, 0.0)
    h2 = r1 @ w_self2 + (a_norm @ r1) @ w_neigh2 + b2
    return h1, r1, h2


if __name__ == "__main__":
    # Small SAGE-consistent shapes: N nodes, in_feats -> hid_feats -> out_class.
    # N=300 exercises independent row/col padding and a 2-row-tile "parallel" axis.
    N, in_feats, hid_feats, out_class = 300, 8, 32, 4

    key = jax.random.PRNGKey(0)
    k_x, k_e, k_ws1, k_wn1, k_b1, k_ws2, k_wn2, k_b2 = jax.random.split(key, 8)

    # Node features
    x = jax.random.normal(k_x, (N, in_feats), dtype=jnp.float32)

    # Deterministic random directed graph -> dense binary adjacency A[dst, src]
    adj = (jax.random.uniform(k_e, (N, N)) < 0.1).astype(jnp.float32)
    adj = adj * (1.0 - jnp.eye(N, dtype=jnp.float32))   # no self loops

    def linear_init(k, fan_in, fan_out):
        bound = 1.0 / jnp.sqrt(jnp.float32(fan_in))
        return jax.random.uniform(k, (fan_in, fan_out), jnp.float32, -bound, bound)

    # conv1: fc_self (no bias), fc_neigh (with bias)
    w_self1 = linear_init(k_ws1, in_feats, hid_feats)
    w_neigh1 = linear_init(k_wn1, in_feats, hid_feats)
    b1 = jax.random.uniform(k_b1, (1, hid_feats), jnp.float32,
                            -1.0 / jnp.sqrt(jnp.float32(in_feats)),
                            1.0 / jnp.sqrt(jnp.float32(in_feats)))
    # conv2
    w_self2 = linear_init(k_ws2, hid_feats, out_class)
    w_neigh2 = linear_init(k_wn2, hid_feats, out_class)
    b2 = jax.random.uniform(k_b2, (1, out_class), jnp.float32,
                            -1.0 / jnp.sqrt(jnp.float32(hid_feats)),
                            1.0 / jnp.sqrt(jnp.float32(hid_feats)))

    fwd = jax.jit(sage_forward)
    h2, middle_feat = fwd(adj, x, w_self1, w_neigh1, b1, w_self2, w_neigh2, b2)
    h1, r1, _ = middle_feat
    jax.block_until_ready((h1, r1, h2))

    # Pure-JAX f32 reference (normalized adjacency). The kernel streams features and the
    # self path in bf16 (f32 accumulate), so use a correspondingly loose tolerance.
    in_deg = adj.sum(axis=1, keepdims=True)
    a_norm = adj / jnp.maximum(in_deg, 1.0)
    h1_ref, r1_ref, h2_ref = sage_reference(a_norm, x, w_self1, w_neigh1, b1,
                                            w_self2, w_neigh2, b2)
    assert jnp.allclose(h1, h1_ref, atol=2e-2, rtol=2e-2), "h1 mismatch"
    assert jnp.allclose(r1, r1_ref, atol=2e-2, rtol=2e-2), "relu(h1) mismatch"
    assert jnp.allclose(h2, h2_ref, atol=2e-2, rtol=2e-2), "h2 mismatch"

    print("KERNEL_OK")
</pallas_src>

<mosaic_0001>
module attributes {stable_mosaic.version = 11 : i64} {
  func.func @kernel(%arg0: i32, %arg1: i32, %arg2: memref<160x384xi8, #tpu.memory_space<vmem>>, %arg3: memref<384x128xbf16, #tpu.memory_space<vmem>>, %arg4: memref<160x128xbf16, #tpu.memory_space<vmem>>, %arg5: memref<160x1xf32, #tpu.memory_space<vmem>>, %arg6: memref<128x128xbf16, #tpu.memory_space<vmem>>, %arg7: memref<1x128xf32, #tpu.memory_space<vmem>>, %arg8: memref<160x128xf32, #tpu.memory_space<vmem>>, %arg9: memref<160x128xf32, #tpu.memory_space<vmem>>) attributes {dimension_semantics = [#tpu.dimension_semantics<parallel>, #tpu.dimension_semantics<arbitrary>], iteration_bounds = array<i64: 2, 1>, scalar_prefetch = 0 : i64, scratch_operands = 1 : i64, tpu.core_type = #tpu.core_type<tc>, window_params = [{transform_indices = @transform_0, window_bounds = array<i64: 160, 384>}, {pipeline_mode = #tpu.pipeline_mode<synchronous>, transform_indices = @transform_1, window_bounds = array<i64: 384, 128>}, {transform_indices = @transform_2, window_bounds = array<i64: 160, 128>}, {transform_indices = @transform_3, window_bounds = array<i64: 160, 1>}, {pipeline_mode = #tpu.pipeline_mode<synchronous>, transform_indices = @transform_4, window_bounds = array<i64: 128, 128>}, {pipeline_mode = #tpu.pipeline_mode<synchronous>, transform_indices = @transform_5, window_bounds = array<i64: 1, 128>}, {transform_indices = @transform_6, window_bounds = array<i64: 160, 128>}]} {
    %c0_i32 = arith.constant 0 : i32
    %0 = arith.cmpi eq, %arg1, %c0_i32 : i32
    %1 = arith.extui %0 : i1 to i32
    %c0_i32_0 = arith.constant 0 : i32
    %2 = arith.cmpi ne, %1, %c0_i32_0 : i32
    scf.if %2 {
      %cst_9 = arith.constant 0.000000e+00 : f32
      %16 = vector.broadcast %cst_9 : f32 to vector<160x128xf32>
      %c0_10 = arith.constant 0 : index
      %c0_11 = arith.constant 0 : index
      %17 = vector.load %arg9[%c0_10, %c0_11] : memref<160x128xf32, #tpu.memory_space<vmem>>, vector<160x128xf32>
      tpu.vector_store %arg9[%c0_10, %c0_11], %16 {strides = array<i32>} : memref<160x128xf32, #tpu.memory_space<vmem>>, vector<160x128xf32>,
    } else {
    }
    %c384_i32 = arith.constant 384 : i32
    %3 = arith.muli %arg1, %c384_i32 : i32
    %4 = tpu.assume_multiple %3, 128 : i32
    %5 = arith.index_cast %4 : i32 to index
    %c0 = arith.constant 0 : index
    %6 = vector.load %arg3[%5, %c0] : memref<384x128xbf16, #tpu.memory_space<vmem>>, vector<384x128xbf16>
    %c0_1 = arith.constant 0 : index
    %c0_2 = arith.constant 0 : index
    %7 = vector.load %arg2[%c0_1, %c0_2] : memref<160x384xi8, #tpu.memory_space<vmem>>, vector<160x384xi8>
    %8 = arith.sitofp %7 : vector<160x384xi8> to vector<160x384xbf16>
    %c0_3 = arith.constant 0 : index
    %c0_4 = arith.constant 0 : index
    %9 = vector.load %arg9[%c0_3, %c0_4] : memref<160x128xf32, #tpu.memory_space<vmem>>, vector<160x128xf32>
    %cst = arith.constant dense<0.000000e+00> : vector<160x128xf32>
    %10 = tpu.matmul %8, %6, %cst {dimension_numbers = #tpu.dot_dimension_numbers<[1], [0], [0], [1], [0, 0, 1, 1], [], []>} : vector<160x384xbf16>, vector<384x128xbf16>, vector<160x128xf32> -> vector<160x128xf32>
    %11 = arith.addf %9, %10 : vector<160x128xf32>
    %c0_5 = arith.constant 0 : index
    %c0_6 = arith.constant 0 : index
    %12 = vector.load %arg9[%c0_5, %c0_6] : memref<160x128xf32, #tpu.memory_space<vmem>>, vector<160x128xf32>
    tpu.vector_store %arg9[%c0_5, %c0_6], %11 {strides = array<i32>} : memref<160x128xf32, #tpu.memory_space<vmem>>, vector<160x128xf32>,
    %c0_i32_7 = arith.constant 0 : i32
    %13 = arith.cmpi eq, %arg1, %c0_i32_7 : i32
    %14 = arith.extui %13 : i1 to i32
    %c0_i32_8 = arith.constant 0 : i32
    %15 = arith.cmpi ne, %14, %c0_i32_8 : i32
    scf.if %15 {
      %c0_9 = arith.constant 0 : index
      %c0_10 = arith.constant 0 : index
      %16 = vector.load %arg9[%c0_9, %c0_10] : memref<160x128xf32, #tpu.memory_space<vmem>>, vector<160x128xf32>
      %c0_11 = arith.constant 0 : index
      %c0_12 = arith.constant 0 : index
      %17 = vector.load %arg5[%c0_11, %c0_12] : memref<160x1xf32, #tpu.memory_space<vmem>>, vector<160x1xf32>
      %18 = vector.broadcast %17 : vector<160x1xf32> to vector<160x128xf32>
      %19 = arith.mulf %16, %18 : vector<160x128xf32>
      %c0_13 = arith.constant 0 : index
      %c0_14 = arith.constant 0 : index
      %20 = vector.load %arg4[%c0_13, %c0_14] : memref<160x128xbf16, #tpu.memory_space<vmem>>, vector<160x128xbf16>
      %c0_15 = arith.constant 0 : index
      %c0_16 = arith.constant 0 : index
      %21 = vector.load %arg6[%c0_15, %c0_16] : memref<128x128xbf16, #tpu.memory_space<vmem>>, vector<128x128xbf16>
      %cst_17 = arith.constant dense<0.000000e+00> : vector<160x128xf32>
      %22 = tpu.matmul %20, %21, %cst_17 {dimension_numbers = #tpu.dot_dimension_numbers<[1], [0], [0], [1], [0, 0, 1, 1], [], []>} : vector<160x128xbf16>, vector<128x128xbf16>, vector<160x128xf32> -> vector<160x128xf32>
      %23 = arith.addf %19, %22 : vector<160x128xf32>
      %c0_18 = arith.constant 0 : index
      %c0_19 = arith.constant 0 : index
      %24 = vector.load %arg7[%c0_18, %c0_19] : memref<1x128xf32, #tpu.memory_space<vmem>>, vector<1x128xf32>
      %25 = vector.broadcast %24 : vector<1x128xf32> to vector<160x128xf32>
      %26 = arith.addf %23, %25 : vector<160x128xf32>
      %c0_20 = arith.constant 0 : index
      %c0_21 = arith.constant 0 : index
      %27 = vector.load %arg8[%c0_20, %c0_21] : memref<160x128xf32, #tpu.memory_space<vmem>>, vector<160x128xf32>
      tpu.vector_store %arg8[%c0_20, %c0_21], %26 {strides = array<i32>} : memref<160x128xf32, #tpu.memory_space<vmem>>, vector<160x128xf32>,
    } else {
    }
    return
  }
  func.func @transform_0(%arg0: i32, %arg1: i32) -> (i32, i32) {
    %c0_i32 = arith.constant 0 : i32
    return %arg0, %arg1 : i32, i32
  }
  func.func @transform_1(%arg0: i32, %arg1: i32) -> (i32, i32) {
    %c0_i32 = arith.constant 0 : i32
    %c0_i32_0 = arith.constant 0 : i32
    %c0_i32_1 = arith.constant 0 : i32
    return %c0_i32, %c0_i32_0 : i32, i32
  }
  func.func @transform_2(%arg0: i32, %arg1: i32) -> (i32, i32) {
    %c0_i32 = arith.constant 0 : i32
    %c0_i32_0 = arith.constant 0 : i32
    return %arg0, %c0_i32 : i32, i32
  }
  func.func @transform_3(%arg0: i32, %arg1: i32) -> (i32, i32) {
    %c0_i32 = arith.constant 0 : i32
    %c0_i32_0 = arith.constant 0 : i32
    return %arg0, %c0_i32 : i32, i32
  }
  func.func @transform_4(%arg0: i32, %arg1: i32) -> (i32, i32) {
    %c0_i32 = arith.constant 0 : i32
    %c0_i32_0 = arith.constant 0 : i32
    %c0_i32_1 = arith.constant 0 : i32
    return %c0_i32, %c0_i32_0 : i32, i32
  }
  func.func @transform_5(%arg0: i32, %arg1: i32) -> (i32, i32) {
    %c0_i32 = arith.constant 0 : i32
    %c0_i32_0 = arith.constant 0 : i32
    %c0_i32_1 = arith.constant 0 : i32
    return %c0_i32, %c0_i32_0 : i32, i32
  }
  func.func @transform_6(%arg0: i32, %arg1: i32) -> (i32, i32) {
    %c0_i32 = arith.constant 0 : i32
    %c0_i32_0 = arith.constant 0 : i32
    return %arg0, %c0_i32 : i32, i32
  }
}

</mosaic_0001>

<bundles_post_ra>
// kernel: sage_forward.2
= control target key start
LH: loop header
LB: loop body
LE: loop exit
PB: predicated region body
PF: predicated region fallthrough
CT: control target
= control target key end

     0   :  { %s1835_s21 = smov 0   ;;  %s1837_s22 = smov 0   ;;  %s2140_s0 = inlined_call_operand.vmem [shape: s8[320,384], index: 0, kind: input, shape index: {}]   ;;  %s2141_s1 = inlined_call_operand.vmem [shape: bf16[384,128], index: 1, kind: input, shape index: {}]   ;;  %s2142_s2 = inlined_call_operand.vmem [shape: bf16[320,128], index: 2, kind: input, shape index: {}]   ;;  %s2143_s3 = inlined_call_operand.vmem [shape: f32[320,1], index: 3, kind: input, shape index: {}]   ;;  %s2144_s4 = inlined_call_operand.vmem [shape: bf16[128,128], index: 4, kind: input, shape index: {}]   ;;  %s2145_s5 = inlined_call_operand.vmem [shape: f32[1,128], index: 5, kind: input, shape index: {}]   ;;  %s2146_s6 = inlined_call_operand.vmem [shape: f32[320,128], index: 6, kind: output, shape index: {}]  }
   0x1   :  { %s1839_s23 = smov 0  }
   0x2 LB: > { %s28_s24 = sadd.s32 1, %s1793_s22  ;;  %p1471_p0 = scmp.ge.s32.totalorder %s1797_s23, 1  ;;  %s1797_s23 = sphi %s1839_s23, %s16_s23   ;;  %s1793_s22 = sphi %s1837_s22, %s2149_s22   ;;  %s1789_s21 = sphi %s1835_s21, %s2148_s21  }
   0x3   : > { %p30_p1 = scmp.ge.s32.totalorder %s28_s24, 2  ;;  %p255_p2 = scmp.lt.s32.totalorder %s1797_s23, 3 }
   0x5   : > { %s2151_s24 = smov (%p30_p1, %s28_s24), 0  ;;  %p256_p3 = pnand %p1471_p0, %p255_p2 }
   0x6   : > { %v1733_v0 = vld [vmem:[%s2141_s1 + $0x40] sm:$0xff] (!%p256_p3)   ;;  %v1736_v3 = vld [vmem:[%s2141_s1 + $0x48] sm:$0xff] (!%p256_p3)   ;;  %s300_s13 = smul.u32 (!%p256_p3), 5, %s1789_s21  ;;  %v1739_v6 = vld [vmem:[%s2141_s1 + $0x50] sm:$0xff] (!%p256_p3)   ;;  %v1799_v11 = vmov (!%p256_p3), 0  }
   0x7   : > { %259 = sbr.rel (%p256_p3) target bundleno = 338 (0x152), region = 44  ;;  %v1734_v1 = vld [vmem:[%s2141_s1 + $0x80] sm:$0xff] (!%p256_p3)   ;;  %1521 = vmatprep.subr.bf16.mxu0 (!%p256_p3), %v1733_v0  ;;  %v1737_v4 = vld [vmem:[%s2141_s1 + $0x88] sm:$0xff] (!%p256_p3)   ;;  %v1740_v7 = vld [vmem:[%s2141_s1 + $0x90] sm:$0xff] (!%p256_p3)   ;;  %1731 = vset.pattern.permute.xlu0 (!%p256_p3), %v1799_v11 }
   0x8   : > { %v1735_v2 = vld [vmem:[%s2141_s1] sm:$0xff] (!%p256_p3)   ;;  %1633 = vmatprep.subr.bf16.mxu1 (!%p256_p3), %v1734_v1  ;;  %v1738_v5 = vld [vmem:[%s2141_s1 + $0x8] sm:$0xff] (!%p256_p3)   ;;  %v1741_v8 = vld [vmem:[%s2141_s1 + $0x10] sm:$0xff] (!%p256_p3)   ;;  %p302_p4 = scmp.lt.s32.totalorder (!%p256_p3), %s300_s13, 9  ;;  %1732 = vset.pattern.permute.xlu1 (!%p256_p3), %v1799_v11  ;;  %s312_s20 = smul.u32 (!%p256_p3), 20, %s1789_s21 }
   0x9   : > { %1522 = vmatpush3.bf16.msra.mxu0 (!%p256_p3), %v1735_v2  ;;  %1634 = vmatpush3.bf16.msra.mxu1 (!%p256_p3), %v1734_v1  ;;  %v1742_v9 = vld [vmem:[%s2141_s1 + $0x58] sm:$0xff] (!%p256_p3)   ;;  %v1745_v13 = vld [vmem:[%s2141_s1 + $0x60] sm:$0xff] (!%p256_p3)   ;;  %v1748_v16 = vld [vmem:[%s2141_s1 + $0x68] sm:$0xff] (!%p256_p3)  }
   0xa   : > { %1523 = vmatprep.subr.bf16.mxu0 (!%p256_p3), %v1736_v3  ;;  %1635 = vmatprep.subr.bf16.mxu1 (!%p256_p3), %v1737_v4  ;;  %v1743_v10 = vld [vmem:[%s2141_s1 + $0x98] sm:$0xff] (!%p256_p3)   ;;  %v1746_v14 = vld [vmem:[%s2141_s1 + $0xa0] sm:$0xff] (!%p256_p3)   ;;  %v1749_v17 = vld [vmem:[%s2141_s1 + $0xa8] sm:$0xff] (!%p256_p3)   ;;  %p1925_p5 = scmp.lt.s32.totalorder (!%p256_p3), %s312_s20, 39 }
   0xb   : > { %v1744_v12 = vld [vmem:[%s2141_s1 + $0x18] sm:$0xff] (!%p256_p3)   ;;  %v1747_v15 = vld [vmem:[%s2141_s1 + $0x20] sm:$0xff] (!%p256_p3)   ;;  %v1750_v18 = vld [vmem:[%s2141_s1 + $0x28] sm:$0xff] (!%p256_p3)  }
   0xc   : > { %v1751_v19 = vld [vmem:[%s2141_s1 + $0x70] sm:$0xff] (!%p256_p3)   ;;  %v1754_v22 = vld [vmem:[%s2141_s1 + $0x78] sm:$0xff] (!%p256_p3)   ;;  %v1757_v30 = vld [vmem:[%s2144_s4] sm:$0xff] (!%p256_p3)  }
   0xd   : > { %1524 = vmatpush3.bf16.msra.mxu0 (!%p256_p3), %v1738_v5  ;;  %1636 = vmatpush3.bf16.msra.mxu1 (!%p256_p3), %v1737_v4  ;;  %v1752_v20 = vld [vmem:[%s2141_s1 + $0xb0] sm:$0xff] (!%p256_p3)   ;;  %v1755_v25 = vld [vmem:[%s2141_s1 + $0xb8] sm:$0xff] (!%p256_p3)   ;;  %v1758_v36 = vld [vmem:[%s2144_s4 + $0x8] sm:$0xff] (!%p256_p3)  }
   0xe   : > { %1525 = vmatprep.subr.bf16.mxu0 %v1739_v6  ;;  %1637 = vmatprep.subr.bf16.mxu1 %v1740_v7  ;;  %s2153_s13 = smov (!%p302_p4, %s300_s13), 9  ;;  %v1753_v21 = vld [vmem:[%s2141_s1 + $0x30] sm:$0xff]   ;;  %v1756_v28 = vld [vmem:[%s2141_s1 + $0x38] sm:$0xff]   ;;  %s2155_s20 = smov (!%p1925_p5, %s312_s20), 39  ;;  %v1761_v47 = vld [vmem:[%s2144_s4 + $0x20] sm:$0xff]  }
   0xf   : > { %s1705_s17 = smul.u32 24, %s2153_s13  ;;  %s1473_s18 = sshll.u32 %s2155_s20, 2  ;;  %v1759_v39 = vld [vmem:[%s2144_s4 + $0x10] sm:$0xff]   ;;  %v1760_v44 = vld [vmem:[%s2144_s4 + $0x18] sm:$0xff]   ;;  %v1762_v54 = vld [vmem:[%s2144_s4 + $0x28] sm:$0xff]  }
  0x10   : > { %s1956_s28 = scalar_lea.vmem %s2142_s2, %s1473_s18  ;;  %s1474_s7 = sshll.u32 %s2155_s20, 3  ;;  %v1763_v59 = vld [vmem:[%s2144_s4 + $0x30] sm:$0xff]   ;;  %v1764_v2 = vld [vmem:[%s2144_s4 + $0x38] sm:$0xff]  }
  0x11   : > { %1526 = vmatpush3.bf16.msra.mxu0 %v1741_v8  ;;  %1638 = vmatpush3.bf16.msra.mxu1 %v1740_v7  ;;  %s1920_s13 = scalar_lea.vmem %s2140_s0, %s1705_s17  ;;  %s1973_s11 = scalar_lea.vmem %s2143_s3, %s1474_s7  ;;  %v1765_v11 = vld [vmem:[%s1956_s28] sm:$0xff]  }
  0x12   : > { %1527 = vmatprep.subr.bf16.mxu0 %v1742_v9  ;;  %1639 = vmatprep.subr.bf16.mxu1 %v1743_v10  ;;  %v409_v23 = vld [vmem:[%s1920_s13 + $0x8] sm:$0xff]  ;;  %v410_v24 = vld [vmem:[%s1920_s13 + $0x10] sm:$0xff]  ;;  %v408_v29 = vld [vmem:[%s1920_s13] sm:$0xff]  ;;  %s2072_s29 = scalar_lea.vmem %s2146_s6, %s1474_s7 }
  0x13   : > { %v424_v26 = vunpack.c.l.s8.bf16 %v409_v23  ;;  %v425_v27 = vunpack.c.l.s8.bf16 %v410_v24  ;;  %v413_v31 = vld [vmem:[%s1920_s13 + $0x28] sm:$0xff]  ;;  %v428_v32 = vunpack.c.h.s8.bf16 %v410_v24  ;;  %v423_v33 = vunpack.c.l.s8.bf16 %v408_v29  ;;  %v412_v37 = vld [vmem:[%s1920_s13 + $0x20] sm:$0xff]  ;;  %v411_v45 = vld [vmem:[%s1920_s13 + $0x18] sm:$0xff] }
  0x14   : > { %v427_v34 = vunpack.c.h.s8.bf16 %v409_v23  ;;  %v431_v35 = vunpack.c.l.s8.bf16 %v413_v31  ;;  %v416_v38 = vld [vmem:[%s1920_s13 + $0x40] sm:$0xff]  ;;  %v426_v40 = vunpack.c.h.s8.bf16 %v408_v29  ;;  %v434_v41 = vunpack.c.h.s8.bf16 %v413_v31  ;;  %v419_v46 = vld [vmem:[%s1920_s13 + $0x58] sm:$0xff]  ;;  %v908_v51 = vld [vmem:[%s1973_s11 + $0x10] sm:$0xff] }
  0x15   : > { %1528 = vmatpush3.bf16.msra.mxu0 %v1744_v12  ;;  %1640 = vmatpush3.bf16.msra.mxu1 %v1743_v10  ;;  %v430_v42 = vunpack.c.l.s8.bf16 %v412_v37  ;;  %v437_v43 = vunpack.c.l.s8.bf16 %v416_v38  ;;  %v429_v48 = vunpack.c.l.s8.bf16 %v411_v45  ;;  %v440_v49 = vunpack.c.h.s8.bf16 %v416_v38  ;;  %v906_v50 = vld [vmem:[%s1973_s11] sm:$0xff]  ;;  %v907_v55 = vld [vmem:[%s1973_s11 + $0x8] sm:$0xff]  ;;  %v909_v56 = vld [vmem:[%s1973_s11 + $0x18] sm:$0xff] }
  0x16   : > { %1529 = vmatprep.subr.bf16.mxu0 %v1745_v13  ;;  %1641 = vmatprep.subr.bf16.mxu1 %v1746_v14  ;;  %v433_v52 = vunpack.c.h.s8.bf16 %v412_v37  ;;  %v443_v53 = vunpack.c.l.s8.bf16 %v419_v46  ;;  %v415_v57 = vld [vmem:[%s1920_s13 + $0x38] sm:$0xff]  ;;  %v422_v58 = vld [vmem:[%s1920_s13 + $0x70] sm:$0xff]  ;;  %v910_v60 = vld [vmem:[%s1973_s11 + $0x20] sm:$0xff]  ;;  %v432_v61 = vunpack.c.h.s8.bf16 %v411_v45  ;;  %v446_v62 = vunpack.c.h.s8.bf16 %v419_v46 }
  0x17   : > { %649 = vmatprep.mubr.bf16.mxu0 %v424_v26  ;;  %1649 = vmatprep.mubr.bf16.mxu1 %v425_v27  ;;  %v911_v63 = vld [vmem:[%s1973_s11 + $0x28] sm:$0xff]  ;;  %v436_v0 = vunpack.c.l.s8.bf16 %v415_v57  ;;  %v449_v1 = vunpack.c.l.s8.bf16 %v422_v58  ;;  %v912_v3 = vld [vmem:[%s1973_s11 + $0x30] sm:$0xff]  ;;  %v913_v4 = vld [vmem:[%s1973_s11 + $0x38] sm:$0xff]  ;;  %v452_v8 = vunpack.c.h.s8.bf16 %v422_v58  ;;  %v439_v10 = vunpack.c.h.s8.bf16 %v415_v57 }
  0x18   : > { %928 = vperm.xlu0 %1731, %v906_v50   ;;  %938 = vperm.xlu1 %1732, %v908_v51   ;;  %v414_v5 = vld [vmem:[%s1920_s13 + $0x30] sm:$0xff]  ;;  %v914_v6 = vld [vmem:[%s1973_s11 + $0x40] sm:$0xff]  ;;  %v915_v9 = vld [vmem:[%s1973_s11 + $0x48] sm:$0xff] }
  0x19   : > { %1530 = vmatpush3.bf16.msra.mxu0 %v1747_v15  ;;  %1642 = vmatpush3.bf16.msra.mxu1 %v1746_v14  ;;  %v435_v7 = vunpack.c.l.s8.bf16 %v414_v5  ;;  %v916_v12 = vld [vmem:[%s1973_s11 + $0x50] sm:$0xff]  ;;  %v917_v13 = vld [vmem:[%s1973_s11 + $0x58] sm:$0xff]  ;;  %v918_v15 = vld [vmem:[%s1973_s11 + $0x60] sm:$0xff] }
  0x1a   : > { %1531 = vmatprep.subr.bf16.mxu0 %v1748_v16  ;;  %1643 = vmatprep.subr.bf16.mxu1 %v1749_v17  ;;  %v418_v14 = vld [vmem:[%s1920_s13 + $0x50] sm:$0xff]  ;;  %v438_v16 = vunpack.c.h.s8.bf16 %v414_v5  ;;  %v417_v23 = vld [vmem:[%s1920_s13 + $0x48] sm:$0xff]  ;;  %v922_v24 = vld [vmem:[%s1973_s11 + $0x80] sm:$0xff] }
  0x1b   : > { %v1768_v26 = vld [vmem:[%s1956_s28 + $0x18] sm:$0xff]   ;;  %v923_v27 = vld [vmem:[%s1973_s11 + $0x88] sm:$0xff]  ;;  %v1769_v29 = vld [vmem:[%s1956_s28 + $0x20] sm:$0xff]  }
  0x1c   : > { %933 = vperm.xlu0 %1731, %v907_v55   ;;  %943 = vperm.xlu1 %1732, %v909_v56   ;;  %v925_v31 = vld [vmem:[%s1973_s11 + $0x98] sm:$0xff]  ;;  %v420_v37 = vld [vmem:[%s1920_s13 + $0x60] sm:$0xff] }
  0x1d   : > { %1532 = vmatpush3.bf16.msra.mxu0 %v1750_v18  ;;  %1644 = vmatpush3.bf16.msra.mxu1 %v1749_v17  ;;  %v1766_v17 = vld [vmem:[%s1956_s28 + $0x8] sm:$0xff]   ;;  %v447_v38 = vunpack.c.l.s8.bf16 %v420_v37 }
  0x1e   : > { %1533 = vmatprep.subr.bf16.mxu0 %v1751_v19  ;;  %1645 = vmatprep.subr.bf16.mxu1 %v1752_v20  ;;  %v919_v18 = vld [vmem:[%s1973_s11 + $0x68] sm:$0xff]  ;;  %v442_v19 = vunpack.c.l.s8.bf16 %v418_v14 }
  0x20   : > { %948 = vperm.xlu0 %1731, %v910_v60   ;;  %953 = vperm.xlu1 %1732, %v911_v63  }
  0x21   : > { %1534 = vmatpush3.bf16.msra.mxu0 %v1753_v21  ;;  %1646 = vmatpush3.bf16.msra.mxu1 %v1752_v20  ;;  %v1767_v20 = vld [vmem:[%s1956_s28 + $0x10] sm:$0xff]  }
  0x22   : > { %1535 = vmatprep.subr.bf16.mxu0 %v1754_v22  ;;  %1647 = vmatprep.subr.bf16.mxu1 %v1755_v25  ;;  %v920_v21 = vld [vmem:[%s1973_s11 + $0x70] sm:$0xff]  ;;  %v921_v22 = vld [vmem:[%s1973_s11 + $0x78] sm:$0xff] }
  0x24   : > { %958 = vperm.xlu0 %1731, %v912_v3   ;;  %963 = vperm.xlu1 %1732, %v913_v4  }
  0x25   : > { %1536 = vmatpush3.bf16.msra.mxu0 %v1756_v28  ;;  %1648 = vmatpush3.bf16.msra.mxu1 %v1755_v25  ;;  %v441_v25 = vunpack.c.l.s8.bf16 %v417_v23  ;;  %v445_v28 = vunpack.c.h.s8.bf16 %v418_v14 }
  0x26   : > { %1669 = vmatprep.subr.bf16.mxu1 %v1757_v30 }
  0x28   : > { %650 = vmatmul.mubr.bf16.vlgmr.msra.gmra.mrb[0].mxu0 %v423_v33  ;;  %1650 = vmatmul.mubr.bf16.vlgmr.msra.gmra.mrb[0].mxu1 %v428_v32  ;;  %v421_v32 = vld [vmem:[%s1920_s13 + $0x68] sm:$0xff]  ;;  %v444_v33 = vunpack.c.h.s8.bf16 %v417_v23 }
  0x29   : > { %1670 = vmatpush3.bf16.msra.mxu1 %v1757_v30  ;;  %657 = vmatprep.mubr.bf16.mxu0 %v427_v34  ;;  %v924_v30 = vld [vmem:[%s1973_s11 + $0x90] sm:$0xff]  ;;  %v1770_v34 = vld [vmem:[%s1956_s28 + $0x28] sm:$0xff]  }
  0x2a   : > { %1653 = vmatprep.mubr.bf16.mxu1 %v431_v35  ;;  %1671 = vmatprep.subr.bf16.mxu1 %v1758_v36  ;;  %v448_v35 = vunpack.c.l.s8.bf16 %v421_v32 }
  0x2b   : > { %968 = vperm.xlu0 %1731, %v914_v6   ;;  %973 = vperm.xlu1 %1732, %v915_v9  }
  0x2d   : > { %1672 = vmatpush3.bf16.msra.mxu1 %v1758_v36  ;;  %v1771_v36 = vld [vmem:[%s1956_s28 + $0x30] sm:$0xff]  }
  0x2e   : > { %1673 = vmatprep.subr.bf16.mxu1 %v1759_v39 }
  0x2f   : > { %978 = vperm.xlu0 %1731, %v916_v12   ;;  %983 = vperm.xlu1 %1732, %v917_v13  }
  0x30   : > { %658 = vmatmul.mubr.bf16.gmra.mrb[4].mxu0 %v426_v40  ;;  %1654 = vmatmul.mubr.bf16.gmra.mrb[4].mxu1 %v434_v41  ;;  %v451_v40 = vunpack.c.h.s8.bf16 %v421_v32  ;;  %v1773_v41 = vld [vmem:[%s1956_s28 + $0x40] sm:$0xff]  }
  0x31   : > { %665 = vmatprep.mubr.bf16.mxu0 %v430_v42  ;;  %1657 = vmatprep.mubr.bf16.mxu1 %v437_v43  ;;  %v450_v42 = vunpack.c.h.s8.bf16 %v420_v37  ;;  %v1774_v43 = vld [vmem:[%s1956_s28 + $0x48] sm:$0xff]  }
  0x32   : > { %1674 = vmatpush3.bf16.msra.mxu1 %v1759_v39  ;;  %v1772_v39 = vld [vmem:[%s1956_s28 + $0x38] sm:$0xff]  }
  0x33   : > { %1675 = vmatprep.subr.bf16.mxu1 %v1760_v44  ;;  %988 = vperm.xlu0 %1731, %v918_v15  }
  0x34   : > { %993 = vperm.xlu1 %1732, %v919_v18  }
  0x36   : > { %1676 = vmatpush3.bf16.msra.mxu1 %v1760_v44 }
  0x37   : > { %1677 = vmatprep.subr.bf16.mxu1 %v1761_v47  ;;  %998 = vperm.xlu0 %1731, %v920_v21  }
  0x38   : > { %666 = vmatmul.mubr.bf16.gmra.mrb[8].mxu0 %v429_v48  ;;  %1658 = vmatmul.mubr.bf16.gmra.mrb[8].mxu1 %v440_v49 }
  0x39   : > { %673 = vmatprep.mubr.bf16.mxu0 %v433_v52  ;;  %1661 = vmatprep.mubr.bf16.mxu1 %v443_v53 }
  0x3a   : > { %1678 = vmatpush3.bf16.msra.mxu1 %v1761_v47  ;;  %1003 = vperm.xlu1 %1732, %v921_v22  }
  0x3b   : > { %1679 = vmatprep.subr.bf16.mxu1 %v1762_v54  ;;  %1008 = vperm.xlu0 %1731, %v922_v24  }
  0x3e   : > { %1680 = vmatpush3.bf16.msra.mxu1 %v1762_v54  ;;  %1013 = vperm.xlu1 %1732, %v923_v27  }
  0x3f   : > { %1681 = vmatprep.subr.bf16.mxu1 %v1763_v59  ;;  %1018 = vperm.xlu0 %1731, %v924_v30  }
  0x40   : > { %674 = vmatmul.mubr.bf16.gmra.mrb[12].mxu0 %v432_v61  ;;  %1662 = vmatmul.mubr.bf16.gmra.mrb[12].mxu1 %v446_v62 }
  0x41   : > { %681 = vmatprep.mubr.bf16.mxu0 %v436_v0  ;;  %1665 = vmatprep.mubr.bf16.mxu1 %v449_v1 }
  0x42   : > { %1682 = vmatpush3.bf16.msra.mxu1 %v1763_v59  ;;  %1023 = vperm.xlu1 %1732, %v925_v31  }
  0x43   : > { %1683 = vmatprep.subr.bf16.mxu1 %v1764_v2 }
  0x46   : > { %1684 = vmatpush3.bf16.msra.mxu1 %v1764_v2 }
  0x48   : > { %682 = vmatmul.mubr.bf16.gmra.mrb[16].mxu0 %v435_v7  ;;  %1666 = vmatmul.mubr.bf16.gmra.mrb[16].mxu1 %v452_v8 }
  0x49   : > { %689 = vmatprep.mubr.bf16.mxu0 %v439_v10  ;;  %1685 = vmatprep.mubr.bf16.mxu1 %v1765_v11 }
  0x50   : > { %690 = vmatmul.mubr.bf16.gmra.mrb[20].mxu0 %v438_v16  ;;  %1686 = vmatmul.mubr.bf16.vlgmr.msra.gmra.mrb[20].mxu1 %v1766_v17 }
  0x51   : > { %697 = vmatprep.mubr.bf16.mxu0 %v442_v19  ;;  %1689 = vmatprep.mubr.bf16.mxu1 %v1767_v20 }
  0x58   : > { %698 = vmatmul.mubr.bf16.gmra.mrb[24].mxu0 %v441_v25  ;;  %1690 = vmatmul.mubr.bf16.gmra.mrb[24].mxu1 %v1768_v26 }
  0x59   : > { %705 = vmatprep.mubr.bf16.mxu0 %v445_v28  ;;  %1693 = vmatprep.mubr.bf16.mxu1 %v1769_v29 }
  0x60   : > { %706 = vmatmul.mubr.bf16.gmra.mrb[28].mxu0 %v444_v33  ;;  %1694 = vmatmul.mubr.bf16.gmra.mrb[28].mxu1 %v1770_v34 }
  0x61   : > { %713 = vmatprep.mubr.bf16.mxu0 %v448_v35  ;;  %1697 = vmatprep.mubr.bf16.mxu1 %v1771_v36 }
  0x68   : > { %714 = vmatmul.mubr.bf16.gmra.mrb[32].mxu0 %v447_v38  ;;  %1698 = vmatmul.mubr.bf16.gmra.mrb[32].mxu1 %v1772_v39 }
  0x69   : > { %721 = vmatprep.mubr.bf16.mxu0 %v451_v40  ;;  %1701 = vmatprep.mubr.bf16.mxu1 %v1773_v41 }
  0x70   : > { %722 = vmatmul.mubr.bf16.gmra.mrb[36].mxu0 %v450_v42  ;;  %1702 = vmatmul.mubr.bf16.gmra.mrb[36].mxu1 %v1774_v43 }
  0x97   : > { %v929_v56 = vpop.permute.xlu0 %928  ;;  %v939_v57 = vpop.permute.xlu1 %938 }
  0x9b   : > { %v934_v6 = vpop.permute.xlu0 %933  ;;  %v944_v7 = vpop.permute.xlu1 %943 }
  0x9f   : > { %v2033_v20 = vpop.permute.xlu1 %953  ;;  %v2035_v21 = vpop.permute.xlu0 %948 }
  0xa3   : > { %v964_v34 = vpop.permute.xlu1 %963  ;;  %v959_v35 = vpop.permute.xlu0 %958 }
  0xfb   : > { %v1537_v44 = vpop.f32.mrb[0].mxu0  ;;  %v1651_v45 = vpop.f32.mrb[0].mxu1 }
  0xfc   : > { %v1538_v46 = vpop.f32.mrb[1].mxu0  ;;  %v764_v47 = vpop.f32.mrb[1].mxu1 }
  0xfd   : > { %v1539_v48 = vadd.f32 %v1538_v46, %v1537_v44  ;;  %v1540_v49 = vpop.f32.mrb[2].mxu0  ;;  %v1652_v50 = vpop.f32.mrb[2].mxu1 }
  0xfe   : > { %v1541_v51 = vpop.f32.mrb[3].mxu0  ;;  %v767_v52 = vpop.f32.mrb[3].mxu1 }
  0xff   : > { %v1542_v53 = vadd.f32 %v1541_v51, %v1540_v49  ;;  %v2025_v54 = vadd.f32 %v1539_v48, %v764_v47  ;;  %v2057_v48 = vpop.permute.xlu1 %973  ;;  %v2059_v49 = vpop.permute.xlu0 %968 }
 0x101   : > { %v2027_v55 = vadd.f32 %v1542_v53, %v767_v52  ;;  %v2064_v53 = vld [vmem:[%s2145_s5] ss:$0 sm:$0xff] }
 0x103   : > { %v1543_v58 = vpop.f32.mrb[4].mxu0  ;;  %v1655_v59 = vpop.f32.mrb[4].mxu1 }
 0x104   : > { %v1544_v60 = vpop.f32.mrb[5].mxu0  ;;  %v780_v61 = vpop.f32.mrb[5].mxu1 }
 0x105   : > { %v1545_v62 = vadd.f32 %v1544_v60, %v1543_v58  ;;  %v1546_v63 = vpop.f32.mrb[6].mxu0  ;;  %v1656_v0 = vpop.f32.mrb[6].mxu1  ;;  %v1026_v58 = vmul.f32 %v929_v56, %v2025_v54 }
 0x106   : > { %v1547_v1 = vpop.f32.mrb[7].mxu0  ;;  %v783_v2 = vpop.f32.mrb[7].mxu1 }
 0x107   : > { %v773_v3 = vadd.f32 %v1651_v45, %v1545_v62  ;;  %v1548_v4 = vadd.f32 %v1547_v1, %v1546_v63 }
 0x109   : > { %v776_v5 = vadd.f32 %v1652_v50, %v1548_v4  ;;  %v1028_v50 = vmul.f32 %v939_v57, %v773_v3  ;;  %v1027_v57 = vmul.f32 %v934_v6, %v2027_v55 }
 0x10b   : > { %v1549_v8 = vpop.f32.mrb[8].mxu0  ;;  %v1659_v9 = vpop.f32.mrb[8].mxu1  ;;  %v1029_v62 = vmul.f32 %v944_v7, %v776_v5 }
 0x10c   : > { %v1550_v10 = vpop.f32.mrb[9].mxu0  ;;  %v796_v11 = vpop.f32.mrb[9].mxu1 }
 0x10d   : > { %v1551_v12 = vadd.f32 %v1550_v10, %v1549_v8  ;;  %v1552_v13 = vpop.f32.mrb[10].mxu0  ;;  %v1660_v14 = vpop.f32.mrb[10].mxu1 }
 0x10e   : > { %v1553_v15 = vpop.f32.mrb[11].mxu0  ;;  %v799_v16 = vpop.f32.mrb[11].mxu1 }
 0x10f   : > { %v2029_v17 = vadd.f32 %v1551_v12, %v780_v61  ;;  %v1554_v18 = vadd.f32 %v1553_v15, %v1552_v13  ;;  %v984_v12 = vpop.permute.xlu1 %983  ;;  %v979_v13 = vpop.permute.xlu0 %978 }
 0x111   : > { %v2031_v19 = vadd.f32 %v1554_v18, %v783_v2 }
 0x113   : > { %v1555_v22 = vpop.f32.mrb[12].mxu0  ;;  %v2037_v23 = vpop.f32.mrb[12].mxu1 }
 0x114   : > { %v1556_v24 = vpop.f32.mrb[13].mxu0  ;;  %v2039_v25 = vpop.f32.mrb[13].mxu1 }
 0x115   : > { %v1557_v26 = vadd.f32 %v1556_v24, %v1555_v22  ;;  %v1558_v27 = vpop.f32.mrb[14].mxu0  ;;  %v2041_v28 = vpop.f32.mrb[14].mxu1 }
 0x116   : > { %v1559_v29 = vpop.f32.mrb[15].mxu0  ;;  %v2043_v30 = vpop.f32.mrb[15].mxu1 }
 0x117   : > { %v789_v31 = vadd.f32 %v1655_v59, %v1557_v26  ;;  %v1560_v32 = vadd.f32 %v1559_v29, %v1558_v27 }
 0x119   : > { %v792_v33 = vadd.f32 %v1656_v0, %v1560_v32  ;;  %v1032_v15 = vmul.f32 %v959_v35, %v789_v31 }
 0x11b   : > { %v1561_v36 = vpop.f32.mrb[16].mxu0  ;;  %v2045_v37 = vpop.f32.mrb[16].mxu1  ;;  %v1033_v27 = vmul.f32 %v964_v34, %v792_v33 }
 0x11c   : > { %v1562_v38 = vpop.f32.mrb[17].mxu0  ;;  %v2047_v39 = vpop.f32.mrb[17].mxu1 }
 0x11d   : > { %v1563_v40 = vadd.f32 %v1562_v38, %v1561_v36  ;;  %v1564_v41 = vpop.f32.mrb[18].mxu0  ;;  %v2049_v42 = vpop.f32.mrb[18].mxu1  ;;  %v1031_v38 = vmul.f32 %v2033_v20, %v2031_v19 }
 0x11e   : > { %v1565_v43 = vpop.f32.mrb[19].mxu0  ;;  %v2051_v44 = vpop.f32.mrb[19].mxu1 }
 0x11f   : > { %v2053_v45 = vadd.f32 %v1563_v40, %v796_v11  ;;  %v1566_v46 = vadd.f32 %v1565_v43, %v1564_v41  ;;  %v994_v20 = vpop.permute.xlu1 %993 }
 0x121   : > { %v2055_v47 = vadd.f32 %v1566_v46, %v799_v16 }
 0x123   : > { %v1567_v51 = vpop.f32.mrb[20].mxu0  ;;  %v1687_v52 = vpop.f32.mrb[20].mxu1 }
 0x124   : > { %v1305_v59 = vadd.f32 %v1687_v52, %v1028_v50  ;;  %v1568_v60 = vpop.f32.mrb[21].mxu0  ;;  %v1224_v61 = vpop.f32.mrb[21].mxu1 }
 0x125   : > { %v1569_v63 = vadd.f32 %v1568_v60, %v1567_v51  ;;  %v1303_v0 = vadd.f32 %v1224_v61, %v1026_v58  ;;  %v1570_v1 = vpop.f32.mrb[22].mxu0  ;;  %v1688_v2 = vpop.f32.mrb[22].mxu1 }
 0x126   : > { %v1332_v54 = vadd.f32 %v2064_v53, %v1305_v59  ;;  %v1306_v56 = vadd.f32 %v1688_v2, %v1029_v62  ;;  %v1571_v3 = vpop.f32.mrb[23].mxu0  ;;  %v1227_v4 = vpop.f32.mrb[23].mxu1 }
 0x127   : > { %v805_v5 = vadd.f32 %v1659_v9, %v1569_v63  ;;  %v1330_v7 = vadd.f32 %v2064_v53, %v1303_v0  ;;  %v1572_v8 = vadd.f32 %v1571_v3, %v1570_v1  ;;  %v1304_v10 = vadd.f32 %v1227_v4, %v1027_v57  ;;  %v989_v50 = vpop.permute.xlu0 %988 }
 0x128   : > { %1352 = vst [vmem:[%s2072_s29 + $0x10] sm:$0xff] %v1332_v54  ;;  %v1333_v11 = vadd.f32 %v2064_v53, %v1306_v56  ;;  %v1030_v9 = vmul.f32 %v2035_v21, %v2029_v17  ;;  %v1035_v1 = vmul.f32 %v2057_v48, %v2055_v47 }
 0x129   : > { %1350 = vst [vmem:[%s2072_s29] sm:$0xff] %v1330_v7  ;;  %v808_v55 = vadd.f32 %v1660_v14, %v1572_v8  ;;  %v1331_v6 = vadd.f32 %v2064_v53, %v1304_v10  ;;  %v1036_v51 = vmul.f32 %v979_v13, %v805_v5 }
 0x12a   : > { %1353 = vst [vmem:[%s2072_s29 + $0x18] sm:$0xff] %v1333_v11  ;;  %v1004_v11 = vpop.permute.xlu1 %1003 }
 0x12b   : > { %1351 = vst [vmem:[%s2072_s29 + $0x8] sm:$0xff] %v1331_v6  ;;  %v1573_v16 = vpop.f32.mrb[24].mxu0  ;;  %v1691_v18 = vpop.f32.mrb[24].mxu1  ;;  %v1037_v62 = vmul.f32 %v984_v12, %v808_v55 }
 0x12c   : > { %v1309_v22 = vadd.f32 %v1691_v18, %v1032_v15  ;;  %v1574_v24 = vpop.f32.mrb[25].mxu0  ;;  %v1240_v26 = vpop.f32.mrb[25].mxu1 }
 0x12d   : > { %v1575_v29 = vadd.f32 %v1574_v24, %v1573_v16  ;;  %v1307_v14 = vadd.f32 %v1240_v26, %v1030_v9  ;;  %v1576_v32 = vpop.f32.mrb[26].mxu0  ;;  %v1692_v36 = vpop.f32.mrb[26].mxu1 }
 0x12e   : > { %v1336_v31 = vadd.f32 %v2064_v53, %v1309_v22  ;;  %v1310_v35 = vadd.f32 %v1692_v36, %v1033_v27  ;;  %v1577_v40 = vpop.f32.mrb[27].mxu0  ;;  %v1243_v17 = vpop.f32.mrb[27].mxu1 }
 0x12f   : > { %v813_v21 = vadd.f32 %v1575_v29, %v2039_v25  ;;  %v1334_v41 = vadd.f32 %v2064_v53, %v1307_v14  ;;  %v1578_v33 = vadd.f32 %v1577_v40, %v1576_v32  ;;  %v1308_v34 = vadd.f32 %v1243_v17, %v1031_v38  ;;  %v999_v7 = vpop.permute.xlu0 %998 }
 0x130   : > { %1356 = vst [vmem:[%s2072_s29 + $0x30] sm:$0xff] %v1336_v31  ;;  %v1337_v43 = vadd.f32 %v2064_v53, %v1310_v35  ;;  %v1034_v25 = vmul.f32 %v2059_v49, %v2053_v45 }
 0x131   : > { %1354 = vst [vmem:[%s2072_s29 + $0x20] sm:$0xff] %v1334_v41  ;;  %v816_v46 = vadd.f32 %v1578_v33, %v2043_v30  ;;  %v1335_v19 = vadd.f32 %v2064_v53, %v1308_v34 }
 0x132   : > { %1357 = vst [vmem:[%s2072_s29 + $0x38] sm:$0xff] %v1337_v43 }
 0x133   : > { %1355 = vst [vmem:[%s2072_s29 + $0x28] sm:$0xff] %v1335_v19  ;;  %v1579_v52 = vpop.f32.mrb[28].mxu0  ;;  %v1695_v58 = vpop.f32.mrb[28].mxu1 }
 0x134   : > { %v1313_v59 = vadd.f32 %v1695_v58, %v1036_v51  ;;  %v1580_v60 = vpop.f32.mrb[29].mxu0  ;;  %v1256_v61 = vpop.f32.mrb[29].mxu1 }
 0x135   : > { %v1581_v57 = vadd.f32 %v1580_v60, %v1579_v52  ;;  %v1311_v30 = vadd.f32 %v1256_v61, %v1034_v25  ;;  %v1582_v63 = vpop.f32.mrb[30].mxu0  ;;  %v1696_v0 = vpop.f32.mrb[30].mxu1 }
 0x136   : > { %v1340_v2 = vadd.f32 %v2064_v53, %v1313_v59  ;;  %v1314_v54 = vadd.f32 %v1696_v0, %v1037_v62  ;;  %v1583_v56 = vpop.f32.mrb[31].mxu0  ;;  %v1259_v45 = vpop.f32.mrb[31].mxu1 }
 0x137   : > { %v821_v49 = vadd.f32 %v2037_v23, %v1581_v57  ;;  %v1338_v3 = vadd.f32 %v2064_v53, %v1311_v30  ;;  %v1584_v4 = vadd.f32 %v1583_v56, %v1582_v63  ;;  %v1312_v5 = vadd.f32 %v1259_v45, %v1035_v1  ;;  %v1009_v41 = vpop.permute.xlu0 %1008 }
 0x138   : > { %1360 = vst [vmem:[%s2072_s29 + $0x50] sm:$0xff] %v1340_v2  ;;  %v1341_v8 = vadd.f32 %v2064_v53, %v1314_v54  ;;  %v1038_v23 = vmul.f32 %v989_v50, %v813_v21  ;;  %v1014_v21 = vpop.permute.xlu1 %1013 }
 0x139   : > { %1358 = vst [vmem:[%s2072_s29 + $0x40] sm:$0xff] %v1338_v3  ;;  %v824_v47 = vadd.f32 %v2041_v28, %v1584_v4  ;;  %v1339_v48 = vadd.f32 %v2064_v53, %v1312_v5  ;;  %v1040_v10 = vmul.f32 %v999_v7, %v821_v49  ;;  %v1039_v28 = vmul.f32 %v994_v20, %v816_v46 }
 0x13a   : > { %1361 = vst [vmem:[%s2072_s29 + $0x58] sm:$0xff] %v1341_v8 }
 0x13b   : > { %1359 = vst [vmem:[%s2072_s29 + $0x48] sm:$0xff] %v1339_v48  ;;  %v1585_v55 = vpop.f32.mrb[32].mxu0  ;;  %v1699_v6 = vpop.f32.mrb[32].mxu1  ;;  %v1041_v12 = vmul.f32 %v1004_v11, %v824_v47 }
 0x13c   : > { %v1317_v13 = vadd.f32 %v1699_v6, %v1040_v10  ;;  %v1586_v15 = vpop.f32.mrb[33].mxu0  ;;  %v1272_v16 = vpop.f32.mrb[33].mxu1 }
 0x13d   : > { %v1587_v18 = vadd.f32 %v1586_v15, %v1585_v55  ;;  %v1315_v9 = vadd.f32 %v1272_v16, %v1038_v23  ;;  %v1588_v22 = vpop.f32.mrb[34].mxu0  ;;  %v1700_v24 = vpop.f32.mrb[34].mxu1 }
 0x13e   : > { %v1344_v26 = vadd.f32 %v2064_v53, %v1317_v13  ;;  %v1318_v27 = vadd.f32 %v1700_v24, %v1041_v12  ;;  %v1589_v29 = vpop.f32.mrb[35].mxu0  ;;  %v1275_v14 = vpop.f32.mrb[35].mxu1 }
 0x13f   : > { %v829_v32 = vadd.f32 %v1587_v18, %v2047_v39  ;;  %v1342_v36 = vadd.f32 %v2064_v53, %v1315_v9  ;;  %v1590_v38 = vadd.f32 %v1589_v29, %v1588_v22  ;;  %v1316_v31 = vadd.f32 %v1275_v14, %v1039_v28  ;;  %v1019_v62 = vpop.permute.xlu0 %1018  ;;  %v1024_v0 = vpop.permute.xlu1 %1023 }
 0x140   : > { %1364 = vst [vmem:[%s2072_s29 + $0x70] sm:$0xff] %v1344_v26  ;;  %v1345_v35 = vadd.f32 %v2064_v53, %v1318_v27 }
 0x141   : > { %1362 = vst [vmem:[%s2072_s29 + $0x60] sm:$0xff] %v1342_v36  ;;  %v832_v40 = vadd.f32 %v1590_v38, %v2051_v44  ;;  %v1343_v17 = vadd.f32 %v2064_v53, %v1316_v31  ;;  %v1042_v43 = vmul.f32 %v1009_v41, %v829_v32 }
 0x142   : > { %1365 = vst [vmem:[%s2072_s29 + $0x78] sm:$0xff] %v1345_v35 }
 0x143   : > { %1363 = vst [vmem:[%s2072_s29 + $0x68] sm:$0xff] %v1343_v17  ;;  %v1591_v33 = vpop.f32.mrb[36].mxu0  ;;  %v1703_v34 = vpop.f32.mrb[36].mxu1  ;;  %v1043_v52 = vmul.f32 %v1014_v21, %v832_v40 }
 0x144   : > { %v1592_v39 = vpop.f32.mrb[37].mxu0  ;;  %v1288_v46 = vpop.f32.mrb[37].mxu1 }
 0x145   : > { %v1593_v19 = vadd.f32 %v1592_v39, %v1591_v33  ;;  %v1319_v20 = vadd.f32 %v1288_v46, %v1042_v43  ;;  %v1594_v50 = vpop.f32.mrb[38].mxu0  ;;  %v1704_v51 = vpop.f32.mrb[38].mxu1 }
 0x146   : > { %v1595_v58 = vpop.f32.mrb[39].mxu0  ;;  %v1291_v44 = vpop.f32.mrb[39].mxu1 }
 0x147   : > { %v837_v25 = vadd.f32 %v2045_v37, %v1593_v19  ;;  %v1346_v59 = vadd.f32 %v2064_v53, %v1319_v20  ;;  %v1596_v60 = vadd.f32 %v1595_v58, %v1594_v50  ;;  %v1320_v61 = vadd.f32 %v1291_v44, %v1043_v52 }
 0x149   : > { %v1044_v57 = vmul.f32 %v1019_v62, %v837_v25  ;;  %1366 = vst [vmem:[%s2072_s29 + $0x80] sm:$0xff] %v1346_v59  ;;  %v840_v30 = vadd.f32 %v2049_v42, %v1596_v60  ;;  %v1347_v63 = vadd.f32 %v2064_v53, %v1320_v61 }
 0x14b   : > { %v1321_v1 = vadd.f32 %v1703_v34, %v1044_v57  ;;  %v1045_v2 = vmul.f32 %v1024_v0, %v840_v30  ;;  %1367 = vst [vmem:[%s2072_s29 + $0x88] sm:$0xff] %v1347_v63 }
 0x14d   : > { %v1348_v54 = vadd.f32 %v2064_v53, %v1321_v1  ;;  %v1322_v56 = vadd.f32 %v1704_v51, %v1045_v2 }
 0x14f   : > { %1368 = vst [vmem:[%s2072_s29 + $0x90] sm:$0xff] %v1348_v54  ;;  %v1349_v37 = vadd.f32 %v2064_v53, %v1322_v56 }
 0x151   : > { %1369 = vst [vmem:[%s2072_s29 + $0x98] sm:$0xff] %v1349_v37 }
 0x152 PF: > { %s16_s23 = sadd.s32 1, %s1797_s23   ;;  %s2148_s21 = smov %s1793_s22 }
 0x153   : > { %p13_p6 = scmp.ge.s32.totalorder %s16_s23, 4   ;;  %s2149_s22 = smov %s2151_s24 }
 0x155   :  { %15 = sbr.rel (!%p13_p6) target bundleno = 2 (0x2), region = 89 }

</bundles_post_ra>
